<compile_context>
chip_gen: v6e
topology: v6e:2x2x1
jax: 0.10.0
libtpu: 0.0.40
codegen_flags: <defaults>
</compile_context>

<pallas_src>
import functools
import math

import jax
import jax.numpy as jnp
from jax import lax
from jax.experimental import pallas as pl
from jax.experimental.pallas import tpu as pltpu

_MIB = 1024 * 1024


# ---------------------------------------------------------------------------
# Kernels
# ---------------------------------------------------------------------------

def _softmax_rows(scores, approx_recip):
    """Numerically-stable row softmax of an f32 (tq, Sk) tile."""
    m = jnp.max(scores, axis=-1, keepdims=True)
    e = jnp.exp(scores - m)
    # TODO(synk): on v6e/v7x a bf16 exp would halve EUP pushes if profiling shows the EUP
    # slot saturating; kept f32 for parity with the f32 PyTorch reference (v5e has no bf16 EUP).
    denom = jnp.sum(e, axis=-1, keepdims=True)
    return e * pl.reciprocal(denom, approx=approx_recip)


def attention_head_kernel(q_ref, k_ref, v_ref,
                          wq_ref, bq_ref, wk_ref, bk_ref, wv_ref, bv_ref,
                          x_ref, attn_ref,
                          k_scr, v_scr, *, approx_recip):
    # grid = (B, Sq tiles); the size-1 batch dim is squeezed out of every ref.
    #   q_ref       (tq, Dm)  query tile for (b, qi)
    #   k_ref/v_ref (Sk, Dm)  full key/value slab for b (constant along qi -> resident)
    #   x_ref       (tq, Df)  output tile
    #   attn_ref    (tq, Sk)  attention-weights tile
    # Project K/V once per batch element and cache them in VMEM scratch; scratch persists
    # across the sequential ("arbitrary") qi axis.
    @pl.when(pl.program_id(1) == 0)
    def _():
        K = jnp.dot(k_ref[...], wk_ref[...], preferred_element_type=jnp.float32) + bk_ref[...]
        V = jnp.dot(v_ref[...], wv_ref[...], preferred_element_type=jnp.float32) + bv_ref[...]
        k_scr[...] = K.astype(jnp.bfloat16)
        v_scr[...] = V.astype(jnp.bfloat16)

    # The 1/sqrt(Df) softmax scale is folded into wq/bq by the wrapper.
    Q = jnp.dot(q_ref[...], wq_ref[...], preferred_element_type=jnp.float32) + bq_ref[...]

    # Q @ K^T without materializing a transpose: contract the last dims of both operands.
    # TODO(synk): confirm via pl.lower_as_mlir that no per-step vxpose of K is inserted.
    scores = lax.dot_general(
        Q.astype(jnp.bfloat16), k_scr[...],
        dimension_numbers=(((1,), (1,)), ((), ())),
        preferred_element_type=jnp.float32)                      # (tq, Sk) f32

    attn = _softmax_rows(scores, approx_recip)
    # TODO(synk): nn.Dropout(p) is identity in eval mode; training-time dropout not implemented.

    out = jnp.dot(attn.astype(jnp.bfloat16), v_scr[...],
                  preferred_element_type=jnp.float32)            # (tq, Df) f32

    # TODO(synk): per-head Df < 128 lowers to masked stores; batch multiple heads per call
    # for a lane-dense output store at real shapes.
    x_ref[...] = out.astype(x_ref.dtype)
    attn_ref[...] = attn.astype(attn_ref.dtype)


def self_attention_fused_kernel(act_ref, w_qkv_ref, b_qkv_ref,
                                x_ref, attn_ref,
                                q_scr, k_scr, v_scr, *, approx_recip):
    # Self-attention fast path (queries is key is values):
    #   act_ref   (S, Dm)     activation slab for b (constant along qi -> resident)
    #   w_qkv_ref (Dm, 3*Df)  [wq*scale | wk | wv]  -> one lane-dense MXU pass
    # The fused projection runs once per batch element; Q rows are sliced per Sq tile.
    tq = x_ref.shape[0]
    Df = x_ref.shape[1]
    qi = pl.program_id(1)

    @pl.when(qi == 0)
    def _():
        qkv = jnp.dot(act_ref[...], w_qkv_ref[...],
                      preferred_element_type=jnp.float32) + b_qkv_ref[...]
        q_scr[...] = qkv[:, :Df].astype(jnp.bfloat16)
        k_scr[...] = qkv[:, Df:2 * Df].astype(jnp.bfloat16)
        v_scr[...] = qkv[:, 2 * Df:].astype(jnp.bfloat16)

    row0 = pl.multiple_of(qi * tq, tq)
    Q = q_scr[pl.ds(row0, tq), :]                                # (tq, Df) bf16

    scores = lax.dot_general(
        Q, k_scr[...],
        dimension_numbers=(((1,), (1,)), ((), ())),
        preferred_element_type=jnp.float32)                      # (tq, S) f32

    attn = _softmax_rows(scores, approx_recip)
    out = jnp.dot(attn.astype(jnp.bfloat16), v_scr[...],
                  preferred_element_type=jnp.float32)            # (tq, Df) f32

    x_ref[...] = out.astype(x_ref.dtype)
    attn_ref[...] = attn.astype(attn_ref.dtype)


# ---------------------------------------------------------------------------
# Wrapper
# ---------------------------------------------------------------------------

def _vmem_limit_bytes():
    """min(3/4 * physical VMEM, 100 MiB): ~48 MiB on v7x, ~96 MiB on v5e/v6e."""
    try:
        cap = pltpu.get_tpu_info().vmem_capacity_bytes
    except Exception:
        cap = 64 * _MIB            # conservative fallback, safe on every generation
    return int(min(cap * 3 // 4, 100 * _MIB))


def _pick_tq(Sq, Sk, Dm, Df, attn_bytes, vmem_limit):
    """Largest Sq tile whose per-step working set fits the VMEM budget (25% headroom)."""
    def fits(tq):
        need = (
            3 * tq * Sk * 4              # scores / exp / attn f32 temporaries
            + 2 * tq * Sk * attn_bytes   # double-buffered attn output block
            + 2 * tq * Df * 4            # double-buffered x output block
            + 2 * tq * Dm * 2            # double-buffered Q activation tile (bf16)
            + 4 * Sk * Dm * 2            # resident key/value activation slabs (bf16)
            + 2 * Sk * Df * 2            # projected K/V kept in scratch (bf16)
            + 6 * Dm * Df * 2            # weights (bf16, double-buffered)
        )
        return need <= (vmem_limit * 3) // 4
    candidates = [c for c in (1024, 512, 256, 128, 64, 32, 16, 8) if c <= Sq]
    for tq in candidates:                # prefer tiles that divide Sq exactly
        if Sq % tq == 0 and fits(tq):
            return tq
    for tq in candidates:
        if fits(tq):
            return tq
    return min(Sq, 8)


def attention_head(queries, key, values, params, *,
                   attn_dtype=jnp.float32, tq=None, exact_softmax=False):
    """Fused Linear(Q/K/V) + scaled-dot-product attention. Returns (x, attention_weights).

    Matches AttentionHead.forward on its first call (empty kmemory/vmemory) in eval mode.
    attn_dtype: dtype of the returned attention weights (f32 matches the PyTorch module;
      pass jnp.bfloat16 on HBM-writeback-bound parts such as v5e).
    exact_softmax: use exact division for the softmax denominator instead of the EUP
      approximate reciprocal.
    """
    B, Sq, Dm = queries.shape
    Sk = key.shape[1]
    Df = params["wq"].shape[1]
    approx_recip = not exact_softmax

    vmem_limit = _vmem_limit_bytes()
    attn_bytes = jnp.dtype(attn_dtype).itemsize
    if tq is None:
        tq = _pick_tq(Sq, Sk, Dm, Df, attn_bytes, vmem_limit)
    tq = min(tq, Sq)
    nq = pl.cdiv(Sq, tq)

    scale = 1.0 / math.sqrt(Df)          # folded into the Q projection (free preprocessing)
    self_attention = (queries is key) and (key is values) and (Sq % tq == 0)

    compiler_params = pltpu.CompilerParams(
        # Batch axis shards across v7x's 2 TensorCores; the Sq axis must stay sequential
        # ("arbitrary") because K/V are projected once at qi == 0 and reused from scratch.
        dimension_semantics=("parallel", "arbitrary"),
        vmem_limit_bytes=vmem_limit,
    )

    sq_dim = pl.Squeezed()               # drop the size-1 batch dim from the kernel refs
    out_shape = (
        jax.ShapeDtypeStruct((B, Sq, Df), jnp.float32),
        jax.ShapeDtypeStruct((B, Sq, Sk), attn_dtype),
    )
    out_specs = [
        pl.BlockSpec((sq_dim, tq, Df), lambda b, qi: (b, qi, 0)),    # x
        pl.BlockSpec((sq_dim, tq, Sk), lambda b, qi: (b, qi, 0)),    # attention_weights
    ]
    # TODO(synk): pl.Buffered(1) on the constant-index weight/bias specs would drop their
    # unused second VMEM buffer; left at the default pending toolchain validation.
    w_spec = lambda n: pl.BlockSpec((Dm, n), lambda b, qi: (0, 0))
    b_spec = lambda n: pl.BlockSpec((1, n), lambda b, qi: (0, 0))

    if self_attention:
        # One (Dm, 3*Df) lane-dense projection per batch element; slice Q/K/V from it.
        w_qkv = jnp.concatenate(
            [params["wq"] * scale, params["wk"], params["wv"]], axis=1).astype(jnp.bfloat16)
        b_qkv = jnp.concatenate(
            [params["bq"] * scale, params["bk"], params["bv"]]
        ).reshape(1, 3 * Df).astype(jnp.float32)
        act = queries.astype(jnp.bfloat16)
        kernel = functools.partial(self_attention_fused_kernel, approx_recip=approx_recip)
        return pl.pallas_call(
            kernel,
            out_shape=out_shape,
            grid_spec=pltpu.PrefetchScalarGridSpec(
                num_scalar_prefetch=0,
                grid=(B, nq),
                in_specs=[
                    pl.BlockSpec((sq_dim, Sq, Dm), lambda b, qi: (b, 0, 0)),  # activations
                    w_spec(3 * Df), b_spec(3 * Df),
                ],
                out_specs=out_specs,
                scratch_shapes=[pltpu.VMEM((Sq, Df), jnp.bfloat16)] * 3,      # Q/K/V cache
            ),
            compiler_params=compiler_params,
        )(act, w_qkv, b_qkv)

    wq = (params["wq"] * scale).astype(jnp.bfloat16)
    wk = params["wk"].astype(jnp.bfloat16)
    wv = params["wv"].astype(jnp.bfloat16)
    bq = (params["bq"] * scale).reshape(1, Df).astype(jnp.float32)
    bk = params["bk"].reshape(1, Df).astype(jnp.float32)
    bv = params["bv"].reshape(1, Df).astype(jnp.float32)

    kernel = functools.partial(attention_head_kernel, approx_recip=approx_recip)
    return pl.pallas_call(
        kernel,
        out_shape=out_shape,
        grid_spec=pltpu.PrefetchScalarGridSpec(
            num_scalar_prefetch=0,
            grid=(B, nq),
            in_specs=[
                pl.BlockSpec((sq_dim, tq, Dm), lambda b, qi: (b, qi, 0)),   # queries tile
                pl.BlockSpec((sq_dim, Sk, Dm), lambda b, qi: (b, 0, 0)),    # key (resident)
                pl.BlockSpec((sq_dim, Sk, Dm), lambda b, qi: (b, 0, 0)),    # values (resident)
                w_spec(Df), b_spec(Df),    # wq, bq (scale pre-folded)
                w_spec(Df), b_spec(Df),    # wk, bk
                w_spec(Df), b_spec(Df),    # wv, bv
            ],
            out_specs=out_specs,
            scratch_shapes=[pltpu.VMEM((Sk, Df), jnp.bfloat16)] * 2,        # projected K/V
        ),
        compiler_params=compiler_params,
    )(queries.astype(jnp.bfloat16), key.astype(jnp.bfloat16), values.astype(jnp.bfloat16),
      wq, bq, wk, bk, wv, bv)


# ---------------------------------------------------------------------------
# Reference / test harness
# ---------------------------------------------------------------------------

def init_params(rng, d_model, d_features):
    """Deterministic init mimicking nn.Linear's uniform(-1/sqrt(fan_in), 1/sqrt(fan_in))."""
    bound = 1.0 / math.sqrt(d_model)
    keys = jax.random.split(rng, 6)
    mk_w = lambda k: jax.random.uniform(k, (d_model, d_features), jnp.float32, -bound, bound)
    mk_b = lambda k: jax.random.uniform(k, (d_features,), jnp.float32, -bound, bound)
    return {
        "wq": mk_w(keys[0]), "bq": mk_b(keys[1]),
        "wk": mk_w(keys[2]), "bk": mk_b(keys[3]),
        "wv": mk_w(keys[4]), "bv": mk_b(keys[5]),
    }


def reference(queries, key, values, params):
    """Pure-JAX f32 reference matching the PyTorch module (first-call / eval-mode path)."""
    Q = queries @ params["wq"] + params["bq"]
    K = key @ params["wk"] + params["bk"]
    V = values @ params["wv"] + params["bv"]
    scores = jnp.einsum("bqd,bkd->bqk", Q, K) / jnp.sqrt(jnp.float32(Q.shape[-1]))
    attn = jax.nn.softmax(scores, axis=-1)
    return attn @ V, attn


if __name__ == "__main__":
    B, S, d_model, d_features = 2, 8, 32, 16

    root = jax.random.PRNGKey(0)
    k_q, k_k, k_v, k_p = jax.random.split(root, 4)
    queries = jax.random.normal(k_q, (B, S, d_model), jnp.float32)
    key = jax.random.normal(k_k, (B, S, d_model), jnp.float32)
    values = jax.random.normal(k_v, (B, S, d_model), jnp.float32)
    params = init_params(k_p, d_model, d_features)

    # General (cross-attention) path.
    x, attn = attention_head(queries, key, values, params)
    jax.block_until_ready((x, attn))
    x_ref, attn_ref = reference(queries, key, values, params)
    assert jnp.allclose(x, x_ref, atol=5e-2, rtol=5e-2), "output mismatch"
    assert jnp.allclose(attn.astype(jnp.float32), attn_ref, atol=2e-2, rtol=2e-2), \
        "attention weights mismatch"

    # Self-attention fast path (fused QKV projection; queries is key is values).
    xs, attns = attention_head(queries, queries, queries, params)
    jax.block_until_ready((xs, attns))
    xs_ref, attns_ref = reference(queries, queries, queries, params)
    assert jnp.allclose(xs, xs_ref, atol=5e-2, rtol=5e-2), "self-attn output mismatch"
    assert jnp.allclose(attns.astype(jnp.float32), attns_ref, atol=2e-2, rtol=2e-2), \
        "self-attn attention weights mismatch"

    print("KERNEL_OK")
</pallas_src>

<mosaic_0001>
module attributes {stable_mosaic.version = 11 : i64} {
  func.func @attention_head_kernel(%arg0: i32, %arg1: i32, %arg2: memref<1x8x32xbf16, #tpu.memory_space<vmem>>, %arg3: memref<1x8x32xbf16, #tpu.memory_space<vmem>>, %arg4: memref<1x8x32xbf16, #tpu.memory_space<vmem>>, %arg5: memref<32x16xbf16, #tpu.memory_space<vmem>>, %arg6: memref<1x16xf32, #tpu.memory_space<vmem>>, %arg7: memref<32x16xbf16, #tpu.memory_space<vmem>>, %arg8: memref<1x16xf32, #tpu.memory_space<vmem>>, %arg9: memref<32x16xbf16, #tpu.memory_space<vmem>>, %arg10: memref<1x16xf32, #tpu.memory_space<vmem>>, %arg11: memref<1x8x16xf32, #tpu.memory_space<vmem>>, %arg12: memref<1x8x8xf32, #tpu.memory_space<vmem>>, %arg13: memref<8x16xbf16, #tpu.memory_space<vmem>>, %arg14: memref<8x16xbf16, #tpu.memory_space<vmem>>) attributes {dimension_semantics = [#tpu.dimension_semantics<parallel>, #tpu.dimension_semantics<arbitrary>], iteration_bounds = array<i64: 2, 1>, scalar_prefetch = 0 : i64, scratch_operands = 2 : i64, tpu.core_type = #tpu.core_type<tc>, window_params = [{transform_indices = @transform_0, window_bounds = array<i64: 1, 8, 32>}, {transform_indices = @transform_1, window_bounds = array<i64: 1, 8, 32>}, {transform_indices = @transform_2, window_bounds = array<i64: 1, 8, 32>}, {pipeline_mode = #tpu.pipeline_mode<synchronous>, transform_indices = @transform_3, window_bounds = array<i64: 32, 16>}, {pipeline_mode = #tpu.pipeline_mode<synchronous>, transform_indices = @transform_4, window_bounds = array<i64: 1, 16>}, {pipeline_mode = #tpu.pipeline_mode<synchronous>, transform_indices = @transform_5, window_bounds = array<i64: 32, 16>}, {pipeline_mode = #tpu.pipeline_mode<synchronous>, transform_indices = @transform_6, window_bounds = array<i64: 1, 16>}, {pipeline_mode = #tpu.pipeline_mode<synchronous>, transform_indices = @transform_7, window_bounds = array<i64: 32, 16>}, {pipeline_mode = #tpu.pipeline_mode<synchronous>, transform_indices = @transform_8, window_bounds = array<i64: 1, 16>}, {transform_indices = @transform_9, window_bounds = array<i64: 1, 8, 16>}, {transform_indices = @transform_10, window_bounds = array<i64: 1, 8, 8>}]} {
    %c0_i32 = arith.constant 0 : i32
    %0 = arith.cmpi eq, %arg1, %c0_i32 : i32
    %1 = arith.extui %0 : i1 to i32
    %c0_i32_0 = arith.constant 0 : i32
    %2 = arith.cmpi ne, %1, %c0_i32_0 : i32
    scf.if %2 {
      %c0_21 = arith.constant 0 : index
      %c0_22 = arith.constant 0 : index
      %c0_23 = arith.constant 0 : index
      %32 = vector.load %arg3[%c0_21, %c0_22, %c0_23] : memref<1x8x32xbf16, #tpu.memory_space<vmem>>, vector<1x8x32xbf16>
      %33 = vector.shape_cast %32 : vector<1x8x32xbf16> to vector<8x32xbf16>
      %c0_24 = arith.constant 0 : index
      %c0_25 = arith.constant 0 : index
      %34 = vector.load %arg7[%c0_24, %c0_25] : memref<32x16xbf16, #tpu.memory_space<vmem>>, vector<32x16xbf16>
      %cst_26 = arith.constant dense<0.000000e+00> : vector<8x16xf32>
      %35 = tpu.matmul %33, %34, %cst_26 {dimension_numbers = #tpu.dot_dimension_numbers<[1], [0], [0], [1], [0, 0, 1, 1], [], []>} : vector<8x32xbf16>, vector<32x16xbf16>, vector<8x16xf32> -> vector<8x16xf32>
      %c0_27 = arith.constant 0 : index
      %c0_28 = arith.constant 0 : index
      %36 = vector.load %arg8[%c0_27, %c0_28] : memref<1x16xf32, #tpu.memory_space<vmem>>, vector<1x16xf32>
      %37 = vector.broadcast %36 : vector<1x16xf32> to vector<8x16xf32>
      %38 = arith.addf %35, %37 : vector<8x16xf32>
      %c0_29 = arith.constant 0 : index
      %c0_30 = arith.constant 0 : index
      %c0_31 = arith.constant 0 : index
      %39 = vector.load %arg4[%c0_29, %c0_30, %c0_31] : memref<1x8x32xbf16, #tpu.memory_space<vmem>>, vector<1x8x32xbf16>
      %40 = vector.shape_cast %39 : vector<1x8x32xbf16> to vector<8x32xbf16>
      %c0_32 = arith.constant 0 : index
      %c0_33 = arith.constant 0 : index
      %41 = vector.load %arg9[%c0_32, %c0_33] : memref<32x16xbf16, #tpu.memory_space<vmem>>, vector<32x16xbf16>
      %cst_34 = arith.constant dense<0.000000e+00> : vector<8x16xf32>
      %42 = tpu.matmul %40, %41, %cst_34 {dimension_numbers = #tpu.dot_dimension_numbers<[1], [0], [0], [1], [0, 0, 1, 1], [], []>} : vector<8x32xbf16>, vector<32x16xbf16>, vector<8x16xf32> -> vector<8x16xf32>
      %c0_35 = arith.constant 0 : index
      %c0_36 = arith.constant 0 : index
      %43 = vector.load %arg10[%c0_35, %c0_36] : memref<1x16xf32, #tpu.memory_space<vmem>>, vector<1x16xf32>
      %44 = vector.broadcast %43 : vector<1x16xf32> to vector<8x16xf32>
      %45 = arith.addf %42, %44 : vector<8x16xf32>
      %46 = arith.truncf %38 : vector<8x16xf32> to vector<8x16xbf16>
      %c0_37 = arith.constant 0 : index
      %c0_38 = arith.constant 0 : index
      %47 = vector.load %arg13[%c0_37, %c0_38] : memref<8x16xbf16, #tpu.memory_space<vmem>>, vector<8x16xbf16>
      tpu.vector_store %arg13[%c0_37, %c0_38], %46 {strides = array<i32>} : memref<8x16xbf16, #tpu.memory_space<vmem>>, vector<8x16xbf16>,
      %48 = arith.truncf %45 : vector<8x16xf32> to vector<8x16xbf16>
      %c0_39 = arith.constant 0 : index
      %c0_40 = arith.constant 0 : index
      %49 = vector.load %arg14[%c0_39, %c0_40] : memref<8x16xbf16, #tpu.memory_space<vmem>>, vector<8x16xbf16>
      tpu.vector_store %arg14[%c0_39, %c0_40], %48 {strides = array<i32>} : memref<8x16xbf16, #tpu.memory_space<vmem>>, vector<8x16xbf16>,
    } else {
    }
    %c0 = arith.constant 0 : index
    %c0_1 = arith.constant 0 : index
    %c0_2 = arith.constant 0 : index
    %3 = vector.load %arg2[%c0, %c0_1, %c0_2] : memref<1x8x32xbf16, #tpu.memory_space<vmem>>, vector<1x8x32xbf16>
    %4 = vector.shape_cast %3 : vector<1x8x32xbf16> to vector<8x32xbf16>
    %c0_3 = arith.constant 0 : index
    %c0_4 = arith.constant 0 : index
    %5 = vector.load %arg5[%c0_3, %c0_4] : memref<32x16xbf16, #tpu.memory_space<vmem>>, vector<32x16xbf16>
    %cst = arith.constant dense<0.000000e+00> : vector<8x16xf32>
    %6 = tpu.matmul %4, %5, %cst {dimension_numbers = #tpu.dot_dimension_numbers<[1], [0], [0], [1], [0, 0, 1, 1], [], []>} : vector<8x32xbf16>, vector<32x16xbf16>, vector<8x16xf32> -> vector<8x16xf32>
    %c0_5 = arith.constant 0 : index
    %c0_6 = arith.constant 0 : index
    %7 = vector.load %arg6[%c0_5, %c0_6] : memref<1x16xf32, #tpu.memory_space<vmem>>, vector<1x16xf32>
    %8 = vector.broadcast %7 : vector<1x16xf32> to vector<8x16xf32>
    %9 = arith.addf %6, %8 : vector<8x16xf32>
    %10 = arith.truncf %9 : vector<8x16xf32> to vector<8x16xbf16>
    %c0_7 = arith.constant 0 : index
    %c0_8 = arith.constant 0 : index
    %11 = vector.load %arg13[%c0_7, %c0_8] : memref<8x16xbf16, #tpu.memory_space<vmem>>, vector<8x16xbf16>
    %cst_9 = arith.constant dense<0.000000e+00> : vector<8x8xf32>
    %12 = tpu.matmul %10, %11, %cst_9 {dimension_numbers = #tpu.dot_dimension_numbers<[1], [1], [0], [0], [0, 0, 1, 0], [], []>} : vector<8x16xbf16>, vector<8x16xbf16>, vector<8x8xf32> -> vector<8x8xf32>
    %cst_10 = arith.constant dense<0xFF800000> : vector<8xf32>
    %13 = vector.multi_reduction <maximumf>, %12, %cst_10 [1] : vector<8x8xf32> to vector<8xf32>
    %14 = vector.shape_cast %13 : vector<8xf32> to vector<8x1xf32>
    %15 = vector.broadcast %14 : vector<8x1xf32> to vector<8x8xf32>
    %16 = arith.subf %12, %15 : vector<8x8xf32>
    %17 = math.exp %16 : vector<8x8xf32>
    %cst_11 = arith.constant dense<0.000000e+00> : vector<8xf32>
    %18 = vector.multi_reduction <add>, %17, %cst_11 [1] : vector<8x8xf32> to vector<8xf32>
    %19 = vector.shape_cast %18 : vector<8xf32> to vector<8x1xf32>
    %20 = tpu.reciprocal %19 {approx = true} : vector<8x1xf32> -> vector<8x1xf32>
    %21 = vector.broadcast %20 : vector<8x1xf32> to vector<8x8xf32>
    %22 = arith.mulf %17, %21 : vector<8x8xf32>
    %23 = arith.truncf %22 : vector<8x8xf32> to vector<8x8xbf16>
    %c0_12 = arith.constant 0 : index
    %c0_13 = arith.constant 0 : index
    %24 = vector.load %arg14[%c0_12, %c0_13] : memref<8x16xbf16, #tpu.memory_space<vmem>>, vector<8x16xbf16>
    %cst_14 = arith.constant dense<0.000000e+00> : vector<8x16xf32>
    %25 = tpu.matmul %23, %24, %cst_14 {dimension_numbers = #tpu.dot_dimension_numbers<[1], [0], [0], [1], [0, 0, 1, 1], [], []>} : vector<8x8xbf16>, vector<8x16xbf16>, vector<8x16xf32> -> vector<8x16xf32>
    %c0_15 = arith.constant 0 : index
    %c0_16 = arith.constant 0 : index
    %c0_17 = arith.constant 0 : index
    %26 = vector.load %arg11[%c0_15, %c0_16, %c0_17] : memref<1x8x16xf32, #tpu.memory_space<vmem>>, vector<1x8x16xf32>
    %27 = vector.shape_cast %26 : vector<1x8x16xf32> to vector<8x16xf32>
    %28 = vector.shape_cast %25 : vector<8x16xf32> to vector<1x8x16xf32>
    tpu.vector_store %arg11[%c0_15, %c0_16, %c0_17], %28 {strides = array<i32>} : memref<1x8x16xf32, #tpu.memory_space<vmem>>, vector<1x8x16xf32>,
    %c0_18 = arith.constant 0 : index
    %c0_19 = arith.constant 0 : index
    %c0_20 = arith.constant 0 : index
    %29 = vector.load %arg12[%c0_18, %c0_19, %c0_20] : memref<1x8x8xf32, #tpu.memory_space<vmem>>, vector<1x8x8xf32>
    %30 = vector.shape_cast %29 : vector<1x8x8xf32> to vector<8x8xf32>
    %31 = vector.shape_cast %22 : vector<8x8xf32> to vector<1x8x8xf32>
    tpu.vector_store %arg12[%c0_18, %c0_19, %c0_20], %31 {strides = array<i32>} : memref<1x8x8xf32, #tpu.memory_space<vmem>>, vector<1x8x8xf32>,
    return
  }
  func.func @transform_0(%arg0: i32, %arg1: i32) -> (i32, i32, i32) {
    %c0_i32 = arith.constant 0 : i32
    %c0_i32_0 = arith.constant 0 : i32
    return %arg0, %arg1, %c0_i32 : i32, i32, i32
  }
  func.func @transform_1(%arg0: i32, %arg1: i32) -> (i32, i32, i32) {
    %c0_i32 = arith.constant 0 : i32
    %c0_i32_0 = arith.constant 0 : i32
    %c0_i32_1 = arith.constant 0 : i32
    return %arg0, %c0_i32, %c0_i32_0 : i32, i32, i32
  }
  func.func @transform_2(%arg0: i32, %arg1: i32) -> (i32, i32, i32) {
    %c0_i32 = arith.constant 0 : i32
    %c0_i32_0 = arith.constant 0 : i32
    %c0_i32_1 = arith.constant 0 : i32
    return %arg0, %c0_i32, %c0_i32_0 : i32, i32, i32
  }
  func.func @transform_3(%arg0: i32, %arg1: i32) -> (i32, i32) {
    %c0_i32 = arith.constant 0 : i32
    %c0_i32_0 = arith.constant 0 : i32
    %c0_i32_1 = arith.constant 0 : i32
    return %c0_i32, %c0_i32_0 : i32, i32
  }
  func.func @transform_4(%arg0: i32, %arg1: i32) -> (i32, i32) {
    %c0_i32 = arith.constant 0 : i32
    %c0_i32_0 = arith.constant 0 : i32
    %c0_i32_1 = arith.constant 0 : i32
    return %c0_i32, %c0_i32_0 : i32, i32
  }
  func.func @transform_5(%arg0: i32, %arg1: i32) -> (i32, i32) {
    %c0_i32 = arith.constant 0 : i32
    %c0_i32_0 = arith.constant 0 : i32
    %c0_i32_1 = arith.constant 0 : i32
    return %c0_i32, %c0_i32_0 : i32, i32
  }
  func.func @transform_6(%arg0: i32, %arg1: i32) -> (i32, i32) {
    %c0_i32 = arith.constant 0 : i32
    %c0_i32_0 = arith.constant 0 : i32
    %c0_i32_1 = arith.constant 0 : i32
    return %c0_i32, %c0_i32_0 : i32, i32
  }
  func.func @transform_7(%arg0: i32, %arg1: i32) -> (i32, i32) {
    %c0_i32 = arith.constant 0 : i32
    %c0_i32_0 = arith.constant 0 : i32
    %c0_i32_1 = arith.constant 0 : i32
    return %c0_i32, %c0_i32_0 : i32, i32
  }
  func.func @transform_8(%arg0: i32, %arg1: i32) -> (i32, i32) {
    %c0_i32 = arith.constant 0 : i32
    %c0_i32_0 = arith.constant 0 : i32
    %c0_i32_1 = arith.constant 0 : i32
    return %c0_i32, %c0_i32_0 : i32, i32
  }
  func.func @transform_9(%arg0: i32, %arg1: i32) -> (i32, i32, i32) {
    %c0_i32 = arith.constant 0 : i32
    %c0_i32_0 = arith.constant 0 : i32
    return %arg0, %arg1, %c0_i32 : i32, i32, i32
  }
  func.func @transform_10(%arg0: i32, %arg1: i32) -> (i32, i32, i32) {
    %c0_i32 = arith.constant 0 : i32
    %c0_i32_0 = arith.constant 0 : i32
    return %arg0, %arg1, %c0_i32 : i32, i32, i32
  }
}

</mosaic_0001>

<bundles_post_ra>
// kernel: tpu_custom_call.1
= control target key start
LH: loop header
LB: loop body
LE: loop exit
PB: predicated region body
PF: predicated region fallthrough
CT: control target
= control target key end

     0   :  { %s1421_s0 = inlined_call_operand.vmem [shape: bf16[2,8,32], index: 0, kind: input, shape index: {}]   ;;  %s1422_s1 = inlined_call_operand.vmem [shape: bf16[2,8,32], index: 1, kind: input, shape index: {}]   ;;  %s1423_s2 = inlined_call_operand.vmem [shape: bf16[2,8,32], index: 2, kind: input, shape index: {}]   ;;  %s1424_s3 = inlined_call_operand.vmem [shape: bf16[32,16], index: 3, kind: input, shape index: {}]   ;;  %s1425_s4 = inlined_call_operand.vmem [shape: f32[1,16], index: 4, kind: input, shape index: {}]   ;;  %s1426_s5 = inlined_call_operand.vmem [shape: bf16[32,16], index: 5, kind: input, shape index: {}]   ;;  %s1427_s6 = inlined_call_operand.vmem [shape: f32[1,16], index: 6, kind: input, shape index: {}]   ;;  %s1428_s7 = inlined_call_operand.vmem [shape: bf16[32,16], index: 7, kind: input, shape index: {}]   ;;  %s1429_s8 = inlined_call_operand.vmem [shape: f32[1,16], index: 8, kind: input, shape index: {}]   ;;  %s1430_s9 = inlined_call_operand.hbm [shape: f32[2,8,16], index: 9, kind: output, shape index: {0}]   ;;  %s1431_s10 = inlined_call_operand.hbm [shape: f32[2,8,8], index: 10, kind: output, shape index: {1}]  }
   0x1   :  { %1434 = sst [smem:[#allocation10_spill]] %s1421_s0 }
   0x2   :  { %1435 = sst [smem:[#allocation11_spill]] %s1422_s1 }
   0x3   :  { %1436 = sst [smem:[#allocation12_spill]] %s1423_s2 }
   0x4   :  { %1437 = sst [smem:[#allocation13_spill]] %s1424_s3 }
   0x5   :  { %16 = vsyncpa [#allocation5], 0 }
   0x6   :  { %18 = vsyncpa [#allocation5 + $0x1], 0 }
   0x7   :  { %19 = vsyncpa [#allocation7], 0 }
   0x8   :  { %21 = vsyncpa [#allocation7 + $0x1], 0  ;;  %s1232_s13 = smov 0   ;;  %s1234_s14 = smov 0  }
   0x9   :  { %s1236_s15 = smov 0   ;;  %s1238_s16 = smov 0  }
   0xa   :  { %s1240_s17 = smov 0   ;;  %s1242_s18 = smov 0  }
   0xb LB: > { %s914_s19 = sadd.s32 4294967295, %s1171_s18   ;;  %s915_s20 = sadd.s32 4294967294, %s1171_s18   ;;  %s1171_s18 = sphi %s1242_s18, %s27_s18   ;;  %s1167_s17 = sphi %s1240_s17, %s1450_s17   ;;  %s1163_s16 = sphi %s1238_s16, %s1449_s16   ;;  %s1159_s15 = sphi %s1236_s15, %s1448_s15   ;;  %s1155_s14 = sphi %s1234_s14, %s1447_s14   ;;  %s1151_s13 = sphi %s1232_s13, %s1446_s13  }
   0xc   : > { %s39_s21 = sadd.s32 1, %s1167_s17  ;;  %s254_s22 = sadd.s32 1, %s1159_s15 }
   0xd   : > { %p41_p0 = scmp.ge.s32.totalorder %s39_s21, 2  ;;  %p264_p1 = scmp.ne.s32.totalorder %s1159_s15, %s1155_s14 }
   0xe   : > { %p265_p2 = scmp.eq.s32.totalorder %s914_s19, 1  ;;  %p270_p3 = scmp.ne.s32.totalorder %s1155_s14, %s1151_s13 }
   0xf   : > { %s1452_s21 = smov (%p41_p0, %s39_s21), 0  ;;  %p271_p5 = scmp.eq.s32.totalorder %s915_s20, 1 }
  0x10   : > { %p1272_p4 = por %p265_p2, %p264_p1  ;;  %s249_s24 = ssub.s32 %s1167_s17, %s1452_s21 }
  0x11   : > { %p918_p6 = scmp.ge.s32.totalorder %s1171_s18, 1  ;;  %p252_p7 = scmp.eq.s32.totalorder %s249_s24, 0 }
  0x12   : > { %p1279_p8 = por %p271_p5, %p270_p3  ;;  %p359_p9 = scmp.lt.s32.totalorder %s1171_s18, 3 }
  0x13   : > { %s1285_s26 = scalar_select %p252_p7, %s1159_s15, %s254_s22  }
  0x14   : > { %p360_p10 = pnand %p918_p6, %p359_p9 }
  0x15   : > { %p412_p11 = scmp.lt.s32.totalorder (!%p360_p10), %s1163_s16, 1  ;;  %s1440_s3 = sld [smem:[#allocation13_spill]] (!%p360_p10) }
  0x16   : > { %363 = sbr.rel (%p360_p10) target bundleno = 965 (0x3c5), region = 56  ;;  %s1441_s1 = sld [smem:[#allocation11_spill]] (!%p360_p10) }
  0x17   : > { %s1442_s0 = sld [smem:[#allocation10_spill]] (!%p360_p10) }
  0x18   : > { %s1443_s2 = sld [smem:[#allocation12_spill]] (!%p360_p10) }
  0x1b   : > { %v1055_v0 = vld [vmem:[%s1426_s5 + $0x8] sm:$0xff]   ;;  %v1173_v1 = vmov 0.0   ;;  %v1056_v2 = vld [vmem:[%s1426_s5] sm:$0xff]   ;;  %vm1174_vm0 = vmmov 0   ;;  %s413_s11 = scalar_select %p412_p11, %s1163_s16, 1  ;;  %vm456_vm1 = vcmask 261120  }
  0x1c   : > { %957 = vmatprep.subr.bf16.mxu0 %v1173_v1  ;;  %965 = vmatprep.subr.bf16.mxu1 %v1173_v1  ;;  %v1057_v3 = vld [vmem:[%s1440_s3 + $0x8] sm:$0xff]   ;;  %v1058_v5 = vld [vmem:[%s1440_s3] sm:$0xff]   ;;  %vm568_vm2 = vcmask 125952   ;;  %vm642_vm3 = vcmask 130048   ;;  %vm706_vm4 = vcmask 1043456   ;;  %vm689_vm5 = vcmask 64512  }
  0x1d   : > { %958 = vmatpush3.bf16.msra.mxu0 %v1055_v0  ;;  %961 = vmatprep.mubr.msk.bf16.mxu0 %vm1174_vm0, %v1173_v1  ;;  %s921_s12 = sshll.u32 %s413_s11, 2  ;;  %v1059_v7 = vld [vmem:[%s1428_s7 + $0x8] sm:$0xff]   ;;  %v1060_v8 = vld [vmem:[%s1428_s7] sm:$0xff]  }
  0x1e   : > { %959 = vmatprep.subr.bf16.mxu0 %v1173_v1  ;;  %969 = vmatprep.mubr.msk.bf16.mxu1 %vm1174_vm0, %v1173_v1  ;;  %s422_s27 = scalar_lea.vmem %s1441_s1, %s921_s12  ;;  %s418_s19 = scalar_lea.vmem %s1442_s0, %s921_s12  ;;  %v924_v10 = vld [vmem:[%s1427_s6] ss:$0 sm:$0xff] }
  0x1f   : > { %v432_v4 = vld [vmem:[%s422_s27] sm:$0xf]  ;;  %966 = vmatpush3.bf16.msra.mxu1 %v1059_v7  ;;  %s426_s30 = scalar_lea.vmem %s1443_s2, %s921_s12  ;;  %s1340_s27 = sand.u32 1, %s1155_s14  }
  0x20   : > { %v572_v6 = vld [vmem:[%s418_s19] sm:$0xf]  ;;  %967 = vmatprep.subr.bf16.mxu1 %v1173_v1  ;;  %s1432_s28 = sshll.u32 %s1340_s27, 3  ;;  %s758_s22 = scalar_lea.sflag [#allocation7], %s1340_s27 }
  0x21   : > { %960 = vmatpush3.bf16.msra.mxu0 %v1056_v2  ;;  %v500_v9 = vld [vmem:[%s426_s30] sm:$0xf]  ;;  %s411_s29 = scalar_lea.vmem [#allocation6], %s1432_s28  ;;  %s1433_s30 = sshll.u32 %s1163_s16, 7 }
  0x22   : > { %973 = vmatprep.subr.bf16.mxu0 %v1173_v1  ;;  %v932_v18 = vld [vmem:[%s1425_s4] ss:$0 sm:$0xff]  ;;  %s784_s12 = scalar_lea.hbm %s1431_s10, %s1433_s30  ;;  %s786_s20 = sshll.u32 %s411_s29, 4  ;;  %s787_s20 = int_to_ptr.vmem [resolvable:$true] %s786_s20 }
  0x23   : > { %968 = vmatpush3.bf16.msra.mxu1 %v1060_v8  ;;  %v928_v26 = vld [vmem:[%s1429_s8] ss:$0 sm:$0xff]  ;;  %s1065_s24 = scalar_lea.vmem %s787_s20, 128  ;;  %s1175_s0 = smov [#allocation6]  }
  0x24   : > { %962 = vmatmul.mubr.msk.bf16.vlgmr.msra.gmra.mxu0 %vm456_vm1, %v432_v4  ;;  %981 = vmatprep.subr.bf16.mxu1 %v1173_v1  ;;  %p1066_p12 = scmp.ne.s32.totalorder %s787_s20, %s1065_s24  ;;  %s1069_s28 = sshll.u32 %s1175_s0, 4  ;;  %s1070_s28 = int_to_ptr.vmem [resolvable:$false] %s1069_s28 }
  0x25   : > { %974 = vmatpush3.bf16.msra.mxu0 %v1057_v3  ;;  %977 = vmatprep.mubr.msk.bf16.mxu0 %vm1174_vm0, %v1173_v1  ;;  %s1071_s1 = scalar_lea.vmem %s1070_s28, 256  ;;  %p1072_p1 = scmp.lt.s32.totalorder %s787_s20, %s1070_s28 }
  0x26   : > { %975 = vmatprep.subr.bf16.mxu0 %v1173_v1  ;;  %970 = vmatmul.mubr.msk.bf16.vlgmr.msra.gmra.mxu1 %vm456_vm1, %v500_v9  ;;  %p1067_p13 = pnand %p1066_p12, %p1272_p4  ;;  %p1073_p2 = scmp.lt.s32.totalorder %s1071_s1, %s1065_s24 }
  0x27   : > { %983 = vmatprep.mubr.msk.bf16.mxu1 %vm1174_vm0, %v1173_v1 }
  0x28   : > { %p1068_p0 = pneg %p1067_p13  ;;  %p1074_p3 = por %p1073_p2, %p1072_p1 }
  0x29   : > { %976 = vmatpush3.bf16.msra.mxu0 %v1058_v5 }
  0x2a   : > { %987 = vmatprep.subr.bf16.mxu0 %v1173_v1  ;;  %p1075_p5 = pnand %p1074_p3, %p1068_p0 }
  0x2c   : > { %978 = vmatmul.mubr.msk.bf16.vlgmr.msra.gmra.mxu0 %vm456_vm1, %v572_v6 }
  0x2d   : > { %989 = vmatprep.mubr.msk.bf16.mxu0 %vm1174_vm0, %v1173_v1 }
  0xe4   : > { %v494_v11 = vpop.f32.mrf.mxu0 }
  0xe5   : > { %v495_v12 = vadd.f32 %v924_v10, %v494_v11 }
  0xe6   : > { %v963_v13 = vpop.f32.mrf.mxu0  ;;  %v561_v27 = vpop.f32.mrf.mxu1 }
  0xe7   : > { %v567_v14 = vpack.c.bf16 %v495_v12, %v495_v12  ;;  %v562_v28 = vadd.f32 %v928_v26, %v561_v27 }
  0xe8   : > { %v497_v15 = vpop.f32.mrf.mxu0  ;;  %v971_v29 = vpop.f32.mrf.mxu1 }
  0xe9   : > { %569 = vst.msk [vmem:[#allocation2] sm:$0xf] %vm568_vm2, %v567_v14  ;;  %v570_v30 = vpack.c.bf16 %v562_v28, %v562_v28 }
  0xea   : > { %v964_v16 = vpop.f32.mrf.mxu0  ;;  %v564_v31 = vpop.f32.mrf.mxu1 }
  0xeb   : > { %571 = vst.msk [vmem:[#allocation3] sm:$0xf] %vm568_vm2, %v570_v30 }
  0xec   : > { %v634_v17 = vpop.f32.mrf.mxu0  ;;  %v972_v32 = vpop.f32.mrf.mxu1 }
  0xed   : > { %v635_v22 = vadd.f32 %v932_v18, %v634_v17 }
  0xee   : > { %v979_v19 = vpop.f32.mrf.mxu0 }
  0xef   : > { %v640_v25 = vpack.c.bf16 %v635_v22, %v635_v22 }
  0xf0   : > { %v641_v20 = vld [vmem:[#allocation2] sm:$0xf]  ;;  %v637_v21 = vpop.f32.mrf.mxu0 }
  0xf1   : > { %v647_v23 = vsel %vm642_vm3, %v641_v20, 0 }
  0xf2   : > { %982 = vmatpush3.bf16.xpose.msra.mxu1 %v647_v23  ;;  %v980_v24 = vpop.f32.mrf.mxu0  ;;  %v702_v33 = vld [vmem:[#allocation3] sm:$0xf] }
  0xf3   : > { %v708_v34 = vsel %vm706_vm4, %v702_v33, 0 }
  0xf4   : > { %988 = vmatpush3.bf16.msra.mxu0 %v708_v34 }
  0xf9   : > { %984 = vmatmul.mubr.msk.bf16.vlgmr.msra.gmra.mxu1 %vm642_vm3, %v640_v25 }
 0x1b9   : > { %v683_v35 = vpop.f32.mrf.mxu1 }
 0x1ba   : > { %v690_v36 = vsel %vm689_vm5, %v683_v35, -inf }
 0x1bb   : > { %691 = vmax.xlane.f32.xlu0 %v690_v36  ;;  %v985_v37 = vpop.f32.mrf.mxu1 }
 0x1bd   : > { %v686_v38 = vpop.f32.mrf.mxu1 }
 0x1bf   : > { %v986_v39 = vpop.f32.mrf.mxu1 }
 0x244   : > { %v692_v40 = vpop.xlane.xlu0 %691 }
 0x245   : > { %v693_v41 = vsub.f32 %v683_v35, %v692_v40 }
 0x247   : > { %v694_v42 = vmul.f32 1.442695, %v693_v41 }
 0x249   : > { %1061 = vpow2.f32 %v694_v42 }
 0x256   : > { %v1062_v43 = vpop.eup %1061 }
 0x257   : > { %v696_v44 = vsel %vm689_vm5, %v1062_v43, 0.0 }
 0x258   : > { %697 = vadd.xlane.f32.xlu0 %v696_v44 }
 0x2e1   : > { %v698_v45 = vpop.xlane.xlu0 %697 }
 0x2e2   : > { %1063 = vrcp.f32 %v698_v45 }
 0x2ef   : > { %v1064_v46 = vpop.eup %1063 }
 0x2f0   : > { %v700_v47 = vmul.f32 %v1064_v46, %v1062_v43 }
 0x2f2   : > { %v701_v48 = vpack.c.bf16 %v700_v47, %v700_v47  ;;  %751 = vst.msk [vmem:[%s411_s29] sm:$0xff] %vm689_vm5, %v700_v47 }
 0x2f4   : > { %990 = vmatmul.mubr.msk.bf16.vlgmr.msra.gmra.mxu0 %vm689_vm5, %v701_v48 }
 0x2f5   : > { %1078 = shalt.err (!%p1075_p5)
}
 0x2f6   : > { %s1079_s2 = scalar_lea.hbm %s784_s12, 128  ;;  %s1083_s19 = scalar_lea.hbm %s1431_s10, 256 }
 0x2f7   : > { %p1080_p6 = scmp.ne.s32.totalorder %s784_s12, %s1079_s2  ;;  %p1084_p10 = scmp.lt.s32.totalorder %s784_s12, %s1431_s10 }
 0x2f8   : > { %p1085_p11 = scmp.lt.s32.totalorder %s1083_s19, %s1079_s2 }
 0x2f9   : > { %p1081_p7 = pnand %p1080_p6, %p1272_p4 }
 0x2fa   : > { %p1086_p12 = por %p1085_p11, %p1084_p10 }
 0x2fb   : > { %p1082_p9 = pneg %p1081_p7 }
 0x2fd   : > { %p1087_p13 = pnand %p1086_p12, %p1082_p9 }
 0x2ff   : > { %1090 = shalt.err (!%p1087_p13)
}
 0x300   : > { %994 = dma.vmem_to_hbm [thread:$0]  (%p1272_p4), %s787_s20, 128, %s784_s12, %s758_s22  }
 0x301   : > { %s1444_s0 = sshll.u32 %s1340_s27, 3  ;;  %s1445_s24 = sshll.u32 %s1163_s16, 7 }
 0x302   : > { %s404_s1 = scalar_lea.vmem [#allocation4], %s1444_s0  ;;  %s1373_s3 = scalar_lea.hbm %s1430_s9, %s1445_s24 }
 0x303   : > { %s772_s28 = sshll.u32 %s404_s1, 4  ;;  %s753_s2 = scalar_lea.sflag [#allocation5], %s1340_s27  ;;  %s1375_s28 = int_to_ptr.vmem [resolvable:$true] %s772_s28 }
 0x304   : > { %s1091_s30 = scalar_lea.vmem %s1375_s28, 128  ;;  %s1176_s16 = smov [#allocation4]  }
 0x305   : > { %p1092_p0 = scmp.ne.s32.totalorder %s1375_s28, %s1091_s30  ;;  %s1095_s12 = sshll.u32 %s1176_s16, 4  ;;  %s1096_s12 = int_to_ptr.vmem [resolvable:$false] %s1095_s12 }
 0x306   : > { %s1097_s20 = scalar_lea.vmem %s1096_s12, 256  ;;  %p1098_p3 = scmp.lt.s32.totalorder %s1375_s28, %s1096_s12 }
 0x307   : > { %p1093_p1 = pnand %p1092_p0, %p1272_p4  ;;  %p1099_p5 = scmp.lt.s32.totalorder %s1097_s20, %s1091_s30 }
 0x309   : > { %p1094_p2 = pneg %p1093_p1  ;;  %p1100_p6 = por %p1099_p5, %p1098_p3 }
 0x30b   : > { %p1101_p7 = pnand %p1100_p6, %p1094_p2 }
 0x3b4   : > { %v744_v49 = vpop.f32.mrf.mxu0 }
 0x3b5   : > { %750 = vst.msk [vmem:[%s404_s1] sm:$0xff] %vm642_vm3, %v744_v49 }
 0x3b6   : > { %v991_v50 = vpop.f32.mrf.mxu0 }
 0x3b7   : > { %1104 = shalt.err (!%p1101_p7)
}
 0x3b8   : > { %s1105_s22 = scalar_lea.hbm %s1373_s3, 128  ;;  %s1109_s0 = scalar_lea.hbm %s1430_s9, 256 }
 0x3b9   : > { %p1106_p9 = scmp.ne.s32.totalorder %s1373_s3, %s1105_s22  ;;  %p1110_p12 = scmp.lt.s32.totalorder %s1373_s3, %s1430_s9 }
 0x3ba   : > { %p1111_p13 = scmp.lt.s32.totalorder %s1109_s0, %s1105_s22 }
 0x3bb   : > { %p1107_p10 = pnand %p1106_p9, %p1272_p4 }
 0x3bc   : > { %p1112_p0 = por %p1111_p13, %p1110_p12 }
 0x3bd   : > { %p1108_p11 = pneg %p1107_p10 }
 0x3bf   : > { %p1113_p1 = pnand %p1112_p0, %p1108_p11 }
 0x3c1   : > { %1116 = shalt.err (!%p1113_p1)
}
 0x3c2   : > { %993 = dma.vmem_to_hbm [thread:$0]  (%p1272_p4), %s1375_s28, 128, %s1373_s3, %s753_s2   ;;  %v747_v51 = vpop.f32.mrf.mxu0 }
 0x3c4   : > { %v992_v52 = vpop.f32.mrf.mxu0 }
 0x3c5 PF: > { %p1004_p2 = scmp.ge.s32.totalorder %s1171_s18, 2  ;;  %s798_s29 = sand.u32 1, %s1151_s13  }
 0x3c6   : > { %s799_s11 = scalar_lea.sflag [#allocation5], %s798_s29 }
 0x3c7   : > { %p998_p3 = pnand %p1004_p2, %p1279_p8 }
 0x3c9   : > { %p999_p5 = pneg %p998_p3 }
 0x3cb   : > { %1142 = dma.done.wait (%p999_p5), %s799_s11, 128  }
 0x3cc   : > { %1144 = vsyncadd (%p999_p5), %s799_s11, 4294967168  ;;  %s808_s30 = scalar_lea.sflag [#allocation7], %s798_s29 }
 0x3cd   : > { %1146 = dma.done.wait (%p999_p5), %s808_s30, 128  }
 0x3ce   : > { %1148 = vsyncadd (%p999_p5), %s808_s30, 4294967168  ;;  %s27_s18 = sadd.s32 1, %s1171_s18   ;;  %s1446_s13 = smov %s1155_s14 }
 0x3cf   : > { %p24_p4 = scmp.ge.s32.totalorder %s27_s18, 4   ;;  %s1447_s14 = smov %s1159_s15 }
 0x3d0   : > { %s1448_s15 = smov %s1285_s26  ;;  %s1449_s16 = smov %s1167_s17 }
 0x3d1   : > { %s1450_s17 = smov %s1452_s21  ;;  %26 = sbr.rel (!%p24_p4) target bundleno = 11 (0xb), region = 118 }
 0x3d6   :  { %813 = vsyncpa [#allocation5], 1 }
 0x3d7   :  { %815 = vsyncpa [#allocation5 + $0x1], 1 }
 0x3d8   :  { %816 = vsyncpa [#allocation7], 1 }
 0x3d9   :  { %818 = vsyncpa [#allocation7 + $0x1], 1 }

</bundles_post_ra>
